<compile_context>
chip_gen: v7x
topology: tpu7x:2x2x1
jax: 0.10.0
libtpu: 0.0.40
codegen_flags: <defaults>
</compile_context>

<pallas_src>
import functools

import jax
import jax.numpy as jnp
from jax.experimental import pallas as pl
from jax.experimental.pallas import tpu as pltpu


# ---------------------------------------------------------------------------
# Static layout constants
# ---------------------------------------------------------------------------
P_HID = 256            # policy hidden width (MLP_BC hidden)
V_HID = 128            # value hidden width, zero-padded to a full lane tile
OUT_LANES = 128        # per-head padded output lanes (logits pad / value pad)
W_LANES = P_HID + V_HID            # 384: lane width of the weight slab
OUT_WIDTH = 2 * OUT_LANES          # 256: fused output width

# bias-slab lane offsets
_B1 = 0                            # [pb1 (256) | vb1_pad (128)]
_PB2 = P_HID + V_HID               # 384
_PB3 = _PB2 + P_HID                # 640
_VB2 = _PB3 + OUT_LANES            # 768
_VB3 = _VB2 + V_HID                # 896
B_LANES = _VB3 + V_HID             # 1024

TB_DEFAULT = 256                   # batch tile for the gridded (large-B) path


# ---------------------------------------------------------------------------
# Kernel: whole network on one batch tile.  x_ref (TB, in_pad),
# w_ref (in_pad + 384, 384), b_ref (1, 1024), out_ref (TB, 256).
# ---------------------------------------------------------------------------
def ppo_kernel(x_ref, w_ref, b_ref, out_ref):
    x = x_ref[...]                                  # (TB, in_pad)
    in_pad = x_ref.shape[1]

    # ---- fused layer 1: [policy_h1 | value_h1] = relu(x @ [pw1|vw1] + b) ----
    w1 = w_ref[0:in_pad, :]                         # (in_pad, 384)
    b1 = b_ref[:, _B1:_B1 + P_HID + V_HID]          # (1, 384)
    h1 = jnp.dot(x, w1, preferred_element_type=jnp.float32) + b1
    h1 = jnp.maximum(h1, 0.0)
    hp = h1[:, 0:P_HID]                             # (TB, 256) policy branch
    hv = h1[:, P_HID:P_HID + V_HID]                 # (TB, 128) value branch

    # ---- policy layers 2 & 3 (rows [in_pad, in_pad+256) of the W slab) ----
    r0 = in_pad
    pw2 = w_ref[r0:r0 + P_HID, 0:P_HID]                       # (256, 256)
    pw3 = w_ref[r0:r0 + P_HID, P_HID:P_HID + OUT_LANES]       # (256, 128)
    pb2 = b_ref[:, _PB2:_PB2 + P_HID]
    pb3 = b_ref[:, _PB3:_PB3 + OUT_LANES]
    hp = jnp.maximum(
        jnp.dot(hp, pw2, preferred_element_type=jnp.float32) + pb2, 0.0)
    logits = jnp.dot(hp, pw3, preferred_element_type=jnp.float32) + pb3

    # ---- value layers 2 & 3 (rows [in_pad+256, in_pad+384), 128-lane padded) ----
    r1 = in_pad + P_HID
    vw2 = w_ref[r1:r1 + V_HID, 0:V_HID]                       # (128, 128)
    vw3 = w_ref[r1:r1 + V_HID, V_HID:2 * V_HID]               # (128, 128)
    vb2 = b_ref[:, _VB2:_VB2 + V_HID]
    vb3 = b_ref[:, _VB3:_VB3 + V_HID]
    hv = jnp.maximum(
        jnp.dot(hv, vw2, preferred_element_type=jnp.float32) + vb2, 0.0)
    value = jnp.dot(hv, vw3, preferred_element_type=jnp.float32) + vb3

    # single lane-dense store: lanes 0:128 logits(padded), 128:256 value(padded)
    out_ref[...] = jnp.concatenate([logits, value], axis=-1).astype(out_ref.dtype)


# ---------------------------------------------------------------------------
# Wrapper-side parameter packing (done once per parameter set).
# ---------------------------------------------------------------------------
def _pad2(a, rows, cols):
    return jnp.pad(a, ((0, rows - a.shape[0]), (0, cols - a.shape[1])))


def _padb(b, n):
    b = jnp.asarray(b, jnp.float32).reshape(1, -1)
    return jnp.pad(b, ((0, 0), (0, n - b.shape[1])))


def pack_params(params, input_dim):
    (pw1, pb1, pw2, pb2, pw3, pb3, vw1, vb1, vw2, vb2, vw3, vb3) = params
    assert pw1.shape[1] == P_HID, "MLP_BC hidden must be 256"
    assert pw3.shape[1] <= OUT_LANES and vw1.shape[1] <= V_HID

    in_pad = max(8, -(-input_dim // 8) * 8)

    # layer-1 fused block (in_pad, 384): [pw1 | vw1_pad]
    w1 = jnp.concatenate([_pad2(pw1, in_pad, P_HID),
                          _pad2(vw1, in_pad, V_HID)], axis=1)
    # policy 2/3 block (256, 384): [pw2 | pw3_pad]
    wp = jnp.concatenate([pw2, _pad2(pw3, P_HID, OUT_LANES)], axis=1)
    # value 2/3 block (128, 384): [vw2_pad | vw3_pad | zeros]
    wv = jnp.concatenate([_pad2(vw2, V_HID, V_HID),
                          _pad2(vw3, V_HID, V_HID),
                          jnp.zeros((V_HID, W_LANES - 2 * V_HID), jnp.float32)],
                         axis=1)
    w_slab = jnp.concatenate([w1, wp, wv], axis=0)          # (in_pad+384, 384)

    b_slab = jnp.concatenate([
        _padb(pb1, P_HID), _padb(vb1, V_HID),               # lanes    0:384
        _padb(pb2, P_HID),                                  # lanes  384:640
        _padb(pb3, OUT_LANES),                              # lanes  640:768
        _padb(vb2, V_HID),                                  # lanes  768:896
        _padb(vb3, V_HID),                                  # lanes  896:1024
    ], axis=1)                                              # (1, 1024)
    return w_slab, b_slab, in_pad


# ---------------------------------------------------------------------------
# pallas_call wrappers
# ---------------------------------------------------------------------------
def _call_single(x_pad, w_slab, b_slab):
    # No grid -> no pipeline loop, no double buffering; whole arrays in VMEM.
    B_pad = x_pad.shape[0]
    return pl.pallas_call(
        ppo_kernel,
        out_shape=jax.ShapeDtypeStruct((B_pad, OUT_WIDTH), jnp.float32),
    )(x_pad, w_slab, b_slab)


def _call_gridded(x_pad, w_slab, b_slab, tb):
    # 1-D batch grid, marked "parallel" so v7x megacore splits batch tiles.
    # Weight/bias index_maps are constant -> fetched once, VMEM-resident.
    B_pad, in_pad = x_pad.shape
    n_tiles = B_pad // tb
    return pl.pallas_call(
        ppo_kernel,
        out_shape=jax.ShapeDtypeStruct((B_pad, OUT_WIDTH), jnp.float32),
        grid=(n_tiles,),
        in_specs=[
            pl.BlockSpec((tb, in_pad), lambda i: (i, 0)),
            pl.BlockSpec(w_slab.shape, lambda i: (0, 0)),
            pl.BlockSpec(b_slab.shape, lambda i: (0, 0)),
        ],
        out_specs=pl.BlockSpec((tb, OUT_WIDTH), lambda i: (i, 0)),
        compiler_params=pltpu.CompilerParams(
            dimension_semantics=("parallel",)),
    )(x_pad, w_slab, b_slab)


@functools.partial(jax.jit, static_argnames=("tb",))
def ppo_forward(x, params, *, tb=TB_DEFAULT):
    """Fused PPO forward. x: (B, input_dim) f32. Returns (logits, value)."""
    B, input_dim = x.shape
    output_dim = params[4].shape[1]   # pw3: (256, output_dim)

    w_slab, b_slab, in_pad = pack_params(params, input_dim)

    if B <= tb:
        B_pad = max(8, -(-B // 8) * 8)
        x_pad = jnp.pad(x, ((0, B_pad - B), (0, in_pad - input_dim)))
        out = _call_single(x_pad, w_slab, b_slab)
    else:
        B_pad = -(-B // tb) * tb
        x_pad = jnp.pad(x, ((0, B_pad - B), (0, in_pad - input_dim)))
        out = _call_gridded(x_pad, w_slab, b_slab, tb)

    logits = out[:B, :output_dim]
    value = out[:B, OUT_LANES:OUT_LANES + 1]
    return logits, value


# ---------------------------------------------------------------------------
# Deterministic init (PyTorch-Linear-style uniform +/- 1/sqrt(fan_in)).
# Weights are (in_features, out_features); biases are (1, out_features).
# ---------------------------------------------------------------------------
def init_linear(key, fan_in, fan_out):
    kw, kb = jax.random.split(key)
    bound = 1.0 / jnp.sqrt(jnp.float32(fan_in))
    w = jax.random.uniform(kw, (fan_in, fan_out), jnp.float32, -bound, bound)
    b = jax.random.uniform(kb, (1, fan_out), jnp.float32, -bound, bound)
    return w, b


def init_ppo_params(key, input_dim, output_dim, hidden_dim, policy_hidden=256):
    keys = jax.random.split(key, 6)
    pw1, pb1 = init_linear(keys[0], input_dim, policy_hidden)
    pw2, pb2 = init_linear(keys[1], policy_hidden, policy_hidden)
    pw3, pb3 = init_linear(keys[2], policy_hidden, output_dim)
    vw1, vb1 = init_linear(keys[3], input_dim, hidden_dim)
    vw2, vb2 = init_linear(keys[4], hidden_dim, hidden_dim)
    vw3, vb3 = init_linear(keys[5], hidden_dim, 1)
    return (pw1, pb1, pw2, pb2, pw3, pb3, vw1, vb1, vw2, vb2, vw3, vb3)


def ppo_forward_ref(x, params):
    """Plain-JAX reference for correctness checking."""
    (pw1, pb1, pw2, pb2, pw3, pb3, vw1, vb1, vw2, vb2, vw3, vb3) = params
    h = jnp.maximum(x @ pw1 + pb1, 0.0)
    h = jnp.maximum(h @ pw2 + pb2, 0.0)
    logits = h @ pw3 + pb3
    v = jnp.maximum(x @ vw1 + vb1, 0.0)
    v = jnp.maximum(v @ vw2 + vb2, 0.0)
    value = v @ vw3 + vb3
    return logits, value


if __name__ == "__main__":
    # LunarLander-v2-like sizes: obs=8, actions=4; small value hidden.
    batch = 2
    input_dim = 8
    output_dim = 4
    hidden_dim = 32

    key = jax.random.PRNGKey(0)
    kx, kp, kx2 = jax.random.split(key, 3)
    x = jax.random.normal(kx, (batch, input_dim), jnp.float32)
    params = init_ppo_params(kp, input_dim, output_dim, hidden_dim)

    # small batch -> no-grid fused path
    logits, value = jax.block_until_ready(ppo_forward(x, params))
    ref_logits, ref_value = ppo_forward_ref(x, params)
    assert logits.shape == (batch, output_dim)
    assert value.shape == (batch, 1)
    assert jnp.allclose(logits, ref_logits, atol=1e-4, rtol=1e-4)
    assert jnp.allclose(value, ref_value, atol=1e-4, rtol=1e-4)

    # larger batch -> batch-tiled "parallel" grid path (VMEM-resident weights)
    big_batch = 600
    xb = jax.random.normal(kx2, (big_batch, input_dim), jnp.float32)
    lb, vb = jax.block_until_ready(ppo_forward(xb, params, tb=256))
    rlb, rvb = ppo_forward_ref(xb, params)
    assert lb.shape == (big_batch, output_dim) and vb.shape == (big_batch, 1)
    assert jnp.allclose(lb, rlb, atol=1e-4, rtol=1e-4)
    assert jnp.allclose(vb, rvb, atol=1e-4, rtol=1e-4)

    print("KERNEL_OK")
</pallas_src>

<mosaic_0001>
module attributes {stable_mosaic.version = 11 : i64} {
  func.func @ppo_kernel(%arg0: memref<8x8xf32, #tpu.memory_space<vmem>>, %arg1: memref<392x384xf32, #tpu.memory_space<vmem>>, %arg2: memref<1x1024xf32, #tpu.memory_space<vmem>>, %arg3: memref<8x256xf32, #tpu.memory_space<vmem>>) attributes {dimension_semantics = [], scalar_prefetch = 0 : i64, scratch_operands = 0 : i64, tpu.core_type = #tpu.core_type<tc>} {
    %c0 = arith.constant 0 : index
    %c0_0 = arith.constant 0 : index
    %0 = vector.load %arg0[%c0, %c0_0] : memref<8x8xf32, #tpu.memory_space<vmem>>, vector<8x8xf32>
    %c0_1 = arith.constant 0 : index
    %c0_2 = arith.constant 0 : index
    %1 = vector.load %arg1[%c0_1, %c0_2] : memref<392x384xf32, #tpu.memory_space<vmem>>, vector<8x384xf32>
    %c0_3 = arith.constant 0 : index
    %c0_4 = arith.constant 0 : index
    %2 = vector.load %arg2[%c0_3, %c0_4] : memref<1x1024xf32, #tpu.memory_space<vmem>>, vector<1x384xf32>
    %cst = arith.constant dense<0.000000e+00> : vector<8x384xf32>
    %3 = tpu.matmul %0, %1, %cst {dimension_numbers = #tpu.dot_dimension_numbers<[1], [0], [0], [1], [0, 0, 1, 1], [], []>} : vector<8x8xf32>, vector<8x384xf32>, vector<8x384xf32> -> vector<8x384xf32>
    %4 = vector.broadcast %2 : vector<1x384xf32> to vector<8x384xf32>
    %5 = arith.addf %3, %4 : vector<8x384xf32>
    %cst_5 = arith.constant 0.000000e+00 : f32
    %6 = vector.broadcast %cst_5 : f32 to vector<8x384xf32>
    %7 = arith.maximumf %5, %6 : vector<8x384xf32>
    %8 = vector.extract_strided_slice %7 {offsets = [0, 0], sizes = [8, 256], strides = [1, 1]} : vector<8x384xf32> to vector<8x256xf32>
    %9 = vector.extract_strided_slice %7 {offsets = [0, 256], sizes = [8, 128], strides = [1, 1]} : vector<8x384xf32> to vector<8x128xf32>
    %c8 = arith.constant 8 : index
    %c0_6 = arith.constant 0 : index
    %10 = vector.load %arg1[%c8, %c0_6] : memref<392x384xf32, #tpu.memory_space<vmem>>, vector<256x256xf32>
    %c8_7 = arith.constant 8 : index
    %c256 = arith.constant 256 : index
    %11 = vector.load %arg1[%c8_7, %c256] : memref<392x384xf32, #tpu.memory_space<vmem>>, vector<256x128xf32>
    %c0_8 = arith.constant 0 : index
    %c384 = arith.constant 384 : index
    %12 = vector.load %arg2[%c0_8, %c384] : memref<1x1024xf32, #tpu.memory_space<vmem>>, vector<1x256xf32>
    %c0_9 = arith.constant 0 : index
    %c640 = arith.constant 640 : index
    %13 = vector.load %arg2[%c0_9, %c640] : memref<1x1024xf32, #tpu.memory_space<vmem>>, vector<1x128xf32>
    %cst_10 = arith.constant dense<0.000000e+00> : vector<8x256xf32>
    %14 = tpu.matmul %8, %10, %cst_10 {dimension_numbers = #tpu.dot_dimension_numbers<[1], [0], [0], [1], [0, 0, 1, 1], [], []>} : vector<8x256xf32>, vector<256x256xf32>, vector<8x256xf32> -> vector<8x256xf32>
    %15 = vector.broadcast %12 : vector<1x256xf32> to vector<8x256xf32>
    %16 = arith.addf %14, %15 : vector<8x256xf32>
    %cst_11 = arith.constant 0.000000e+00 : f32
    %17 = vector.broadcast %cst_11 : f32 to vector<8x256xf32>
    %18 = arith.maximumf %16, %17 : vector<8x256xf32>
    %cst_12 = arith.constant dense<0.000000e+00> : vector<8x128xf32>
    %19 = tpu.matmul %18, %11, %cst_12 {dimension_numbers = #tpu.dot_dimension_numbers<[1], [0], [0], [1], [0, 0, 1, 1], [], []>} : vector<8x256xf32>, vector<256x128xf32>, vector<8x128xf32> -> vector<8x128xf32>
    %20 = vector.broadcast %13 : vector<1x128xf32> to vector<8x128xf32>
    %21 = arith.addf %19, %20 : vector<8x128xf32>
    %c264 = arith.constant 264 : index
    %c0_13 = arith.constant 0 : index
    %22 = vector.load %arg1[%c264, %c0_13] : memref<392x384xf32, #tpu.memory_space<vmem>>, vector<128x128xf32>
    %c264_14 = arith.constant 264 : index
    %c128 = arith.constant 128 : index
    %23 = vector.load %arg1[%c264_14, %c128] : memref<392x384xf32, #tpu.memory_space<vmem>>, vector<128x128xf32>
    %c0_15 = arith.constant 0 : index
    %c768 = arith.constant 768 : index
    %24 = vector.load %arg2[%c0_15, %c768] : memref<1x1024xf32, #tpu.memory_space<vmem>>, vector<1x128xf32>
    %c0_16 = arith.constant 0 : index
    %c896 = arith.constant 896 : index
    %25 = vector.load %arg2[%c0_16, %c896] : memref<1x1024xf32, #tpu.memory_space<vmem>>, vector<1x128xf32>
    %cst_17 = arith.constant dense<0.000000e+00> : vector<8x128xf32>
    %26 = tpu.matmul %9, %22, %cst_17 {dimension_numbers = #tpu.dot_dimension_numbers<[1], [0], [0], [1], [0, 0, 1, 1], [], []>} : vector<8x128xf32>, vector<128x128xf32>, vector<8x128xf32> -> vector<8x128xf32>
    %27 = vector.broadcast %24 : vector<1x128xf32> to vector<8x128xf32>
    %28 = arith.addf %26, %27 : vector<8x128xf32>
    %cst_18 = arith.constant 0.000000e+00 : f32
    %29 = vector.broadcast %cst_18 : f32 to vector<8x128xf32>
    %30 = arith.maximumf %28, %29 : vector<8x128xf32>
    %cst_19 = arith.constant dense<0.000000e+00> : vector<8x128xf32>
    %31 = tpu.matmul %30, %23, %cst_19 {dimension_numbers = #tpu.dot_dimension_numbers<[1], [0], [0], [1], [0, 0, 1, 1], [], []>} : vector<8x128xf32>, vector<128x128xf32>, vector<8x128xf32> -> vector<8x128xf32>
    %32 = vector.broadcast %25 : vector<1x128xf32> to vector<8x128xf32>
    %33 = arith.addf %31, %32 : vector<8x128xf32>
    %34 = tpu.concatenate %21, %33 in 1 : vector<8x128xf32>, vector<8x128xf32> -> vector<8x256xf32>
    %c0_20 = arith.constant 0 : index
    %c0_21 = arith.constant 0 : index
    %35 = vector.load %arg3[%c0_20, %c0_21] : memref<8x256xf32, #tpu.memory_space<vmem>>, vector<8x256xf32>
    tpu.vector_store %arg3[%c0_20, %c0_21], %34 {strides = array<i32>} : memref<8x256xf32, #tpu.memory_space<vmem>>, vector<8x256xf32>,
    return
  }
}

</mosaic_0001>

<bundles_post_ra>
// kernel: ppo_forward.1
= control target key start
LH: loop header
LB: loop body
LE: loop exit
PB: predicated region body
PF: predicated region fallthrough
CT: control target
= control target key end

     0   :  { %v932_v2 = vmov 0.0   ;;  %vm35_vm0 = vcmask 64512   ;;  %vm933_vm1 = vmmov 0   ;;  %s1412_s1 = inlined_call_operand.vmem [shape: f32[392,384], index: 1, kind: input, shape index: {}]   ;;  %s1413_s0 = inlined_call_operand.vmem [shape: f32[8,8], index: 0, kind: input, shape index: {}]   ;;  %s1414_s2 = inlined_call_operand.vmem [shape: f32[1,1024], index: 2, kind: input, shape index: {}]   ;;  %s1415_s3 = inlined_call_operand.vmem [shape: f32[8,256], index: 3, kind: output, shape index: {}]  }
   0x1   :  { %v16_v0 = vld [vmem:[%s1412_s1 + $0x8] sm:$0xff]  ;;  %v15_v1 = vld [vmem:[%s1412_s1] sm:$0xff]  ;;  %103 = vmatprep.mubr.f32.mxu1 %v932_v2  ;;  %v186_v5 = vld [vmem:[%s1412_s1 + $0x38] sm:$0xff] }
   0x2   :  { %v965_v3 = vld [vmem:[%s1413_s0] sm:$0xff]  ;;  %39 = vmatprep.subr.mxu1 %v16_v0  ;;  %v183_v6 = vld [vmem:[%s1412_s1 + $0x18] sm:$0xff]  ;;  %v185_v8 = vld [vmem:[%s1412_s1 + $0x30] sm:$0xff] }
   0x3   :  { %v184_v4 = vld [vmem:[%s1412_s1 + $0x20] sm:$0xff]  ;;  %40 = vmatpush1.msra.mxu1 %v15_v1  ;;  %v188_v9 = vld [vmem:[%s1412_s1 + $0x50] sm:$0xff]  ;;  %v190_v10 = vld [vmem:[%s1412_s1 + $0x68] sm:$0xff]  ;;  %v787_v11 = vpack.c.bf16 %v185_v8, %v183_v6 }
   0x4   :  { %v785_v7 = vpack.c.bf16 %v186_v5, %v184_v4  ;;  %634 = vmatmul.mubr.msk.f32.vlgmr.msra.gmra.mrb[0].mxu1 %vm35_vm0, %v965_v3  ;;  %v789_v12 = vpack.c.bf16 %v190_v10, %v188_v9  ;;  %v187_v13 = vld [vmem:[%s1412_s1 + $0x48] sm:$0xff]  ;;  %v189_v14 = vld [vmem:[%s1412_s1 + $0x60] sm:$0xff]  ;;  %710 = vmatprep.subr.mxu1 %v932_v2  ;;  %v194_v16 = vld [vmem:[%s1412_s1 + $0x98] sm:$0xff] }
   0x5   :  { %v192_v15 = vld [vmem:[%s1412_s1 + $0x80] sm:$0xff]  ;;  %v791_v17 = vpack.c.bf16 %v189_v14, %v187_v13  ;;  %v191_v19 = vld [vmem:[%s1412_s1 + $0x78] sm:$0xff]  ;;  %v193_v20 = vld [vmem:[%s1412_s1 + $0x90] sm:$0xff]  ;;  %712 = vmatprep.mubr.msk.f32.mxu1 %vm933_vm1, %v932_v2 }
   0x6   :  { %786 = vmatprep.subr.bf16.mxu0 %v785_v7  ;;  %v793_v18 = vpack.c.bf16 %v194_v16, %v192_v15  ;;  %v196_v21 = vld [vmem:[%s1412_s1 + $0xb0] sm:$0xff]  ;;  %v198_v22 = vld [vmem:[%s1412_s1 + $0xc8] sm:$0xff]  ;;  %v795_v23 = vpack.c.bf16 %v193_v20, %v191_v19  ;;  %v197_v26 = vld [vmem:[%s1412_s1 + $0xc0] sm:$0xff] }
   0x7   :  { %788 = vmatpush1.bf16.msra.mxu0 %v787_v11  ;;  %v797_v24 = vpack.c.bf16 %v198_v22, %v196_v21  ;;  %v195_v25 = vld [vmem:[%s1412_s1 + $0xa8] sm:$0xff]  ;;  %v200_v27 = vld [vmem:[%s1412_s1 + $0xe0] sm:$0xff]  ;;  %v202_v28 = vld [vmem:[%s1412_s1 + $0xf8] sm:$0xff] }
   0x8   :  { %790 = vmatprep.subr.bf16.mxu0 %v789_v12  ;;  %v799_v29 = vpack.c.bf16 %v197_v26, %v195_v25  ;;  %v801_v30 = vpack.c.bf16 %v202_v28, %v200_v27  ;;  %v199_v31 = vld [vmem:[%s1412_s1 + $0xd8] sm:$0xff]  ;;  %v201_v32 = vld [vmem:[%s1412_s1 + $0xf0] sm:$0xff]  ;;  %v206_v34 = vld [vmem:[%s1412_s1 + $0x128] sm:$0xff] }
   0x9   :  { %v204_v33 = vld [vmem:[%s1412_s1 + $0x110] sm:$0xff]  ;;  %v803_v35 = vpack.c.bf16 %v201_v32, %v199_v31  ;;  %v203_v37 = vld [vmem:[%s1412_s1 + $0x108] sm:$0xff]  ;;  %v205_v38 = vld [vmem:[%s1412_s1 + $0x120] sm:$0xff] }
   0xa   :  { %v805_v36 = vpack.c.bf16 %v206_v34, %v204_v33  ;;  %v208_v39 = vld [vmem:[%s1412_s1 + $0x140] sm:$0xff]  ;;  %v210_v40 = vld [vmem:[%s1412_s1 + $0x158] sm:$0xff]  ;;  %v807_v41 = vpack.c.bf16 %v205_v38, %v203_v37  ;;  %v209_v44 = vld [vmem:[%s1412_s1 + $0x150] sm:$0xff] }
   0xb   :  { %792 = vmatpush1.bf16.msra.mxu0 %v791_v17  ;;  %v809_v42 = vpack.c.bf16 %v210_v40, %v208_v39  ;;  %v207_v43 = vld [vmem:[%s1412_s1 + $0x138] sm:$0xff]  ;;  %v212_v45 = vld [vmem:[%s1412_s1 + $0x170] sm:$0xff]  ;;  %v214_v46 = vld [vmem:[%s1412_s1 + $0x188] sm:$0xff] }
   0xc   :  { %794 = vmatprep.subr.bf16.mxu0 %v793_v18  ;;  %v811_v47 = vpack.c.bf16 %v209_v44, %v207_v43  ;;  %v813_v48 = vpack.c.bf16 %v214_v46, %v212_v45  ;;  %v211_v49 = vld [vmem:[%s1412_s1 + $0x168] sm:$0xff]  ;;  %v213_v50 = vld [vmem:[%s1412_s1 + $0x180] sm:$0xff]  ;;  %v218_v52 = vld [vmem:[%s1412_s1 + $0x1b8] sm:$0xff] }
   0xd   :  { %v216_v51 = vld [vmem:[%s1412_s1 + $0x1a0] sm:$0xff]  ;;  %v815_v53 = vpack.c.bf16 %v213_v50, %v211_v49  ;;  %v215_v55 = vld [vmem:[%s1412_s1 + $0x198] sm:$0xff]  ;;  %v217_v56 = vld [vmem:[%s1412_s1 + $0x1b0] sm:$0xff] }
   0xe   :  { %v817_v54 = vpack.c.bf16 %v218_v52, %v216_v51  ;;  %v220_v57 = vld [vmem:[%s1412_s1 + $0x1d0] sm:$0xff]  ;;  %v222_v58 = vld [vmem:[%s1412_s1 + $0x1e8] sm:$0xff]  ;;  %v819_v59 = vpack.c.bf16 %v217_v56, %v215_v55  ;;  %v221_v62 = vld [vmem:[%s1412_s1 + $0x1e0] sm:$0xff] }
   0xf   :  { %796 = vmatpush1.bf16.msra.mxu0 %v795_v23  ;;  %v821_v60 = vpack.c.bf16 %v222_v58, %v220_v57  ;;  %v219_v61 = vld [vmem:[%s1412_s1 + $0x1c8] sm:$0xff]  ;;  %v224_v63 = vld [vmem:[%s1412_s1 + $0x200] sm:$0xff]  ;;  %v226_v0 = vld [vmem:[%s1412_s1 + $0x218] sm:$0xff] }
  0x10   :  { %798 = vmatprep.subr.bf16.mxu0 %v797_v24  ;;  %v823_v1 = vpack.c.bf16 %v221_v62, %v219_v61  ;;  %v825_v4 = vpack.c.bf16 %v226_v0, %v224_v63  ;;  %v223_v5 = vld [vmem:[%s1412_s1 + $0x1f8] sm:$0xff]  ;;  %v225_v6 = vld [vmem:[%s1412_s1 + $0x210] sm:$0xff]  ;;  %v230_v8 = vld [vmem:[%s1412_s1 + $0x248] sm:$0xff] }
  0x11   :  { %v228_v7 = vld [vmem:[%s1412_s1 + $0x230] sm:$0xff]  ;;  %v827_v9 = vpack.c.bf16 %v225_v6, %v223_v5  ;;  %v227_v11 = vld [vmem:[%s1412_s1 + $0x228] sm:$0xff]  ;;  %v229_v12 = vld [vmem:[%s1412_s1 + $0x240] sm:$0xff] }
  0x12   :  { %v829_v10 = vpack.c.bf16 %v230_v8, %v228_v7  ;;  %v232_v13 = vld [vmem:[%s1412_s1 + $0x260] sm:$0xff]  ;;  %v234_v14 = vld [vmem:[%s1412_s1 + $0x278] sm:$0xff]  ;;  %v831_v15 = vpack.c.bf16 %v229_v12, %v227_v11  ;;  %v233_v18 = vld [vmem:[%s1412_s1 + $0x270] sm:$0xff] }
  0x13   :  { %800 = vmatpush1.bf16.msra.mxu0 %v799_v29  ;;  %v833_v16 = vpack.c.bf16 %v234_v14, %v232_v13  ;;  %v231_v17 = vld [vmem:[%s1412_s1 + $0x258] sm:$0xff]  ;;  %v236_v19 = vld [vmem:[%s1412_s1 + $0x290] sm:$0xff]  ;;  %v238_v20 = vld [vmem:[%s1412_s1 + $0x2a8] sm:$0xff] }
  0x14   :  { %802 = vmatprep.subr.bf16.mxu0 %v801_v30  ;;  %v835_v21 = vpack.c.bf16 %v233_v18, %v231_v17  ;;  %v837_v22 = vpack.c.bf16 %v238_v20, %v236_v19  ;;  %v235_v23 = vld [vmem:[%s1412_s1 + $0x288] sm:$0xff]  ;;  %v237_v24 = vld [vmem:[%s1412_s1 + $0x2a0] sm:$0xff]  ;;  %v242_v26 = vld [vmem:[%s1412_s1 + $0x2d8] sm:$0xff]  ;;  %v20_v18 = vlaneseq }
  0x15   :  { %v240_v25 = vld [vmem:[%s1412_s1 + $0x2c0] sm:$0xff]  ;;  %v839_v27 = vpack.c.bf16 %v237_v24, %v235_v23  ;;  %v239_v29 = vld [vmem:[%s1412_s1 + $0x2b8] sm:$0xff]  ;;  %v241_v30 = vld [vmem:[%s1412_s1 + $0x2d0] sm:$0xff] }
  0x16   :  { %v841_v28 = vpack.c.bf16 %v242_v26, %v240_v25  ;;  %v843_v31 = vpack.c.bf16 %v241_v30, %v239_v29  ;;  %v244_v32 = vld [vmem:[%s1412_s1 + $0x2f0] sm:$0xff]  ;;  %v246_v33 = vld [vmem:[%s1412_s1 + $0x308] sm:$0xff]  ;;  %v264_v40 = vld [vmem:[%s1412_s1 + $0x1c0] sm:$0xff]  ;;  %v1253_v19 = vshrl.u32 %v20_v18, 7 }
  0x17   :  { %804 = vmatpush1.bf16.msra.mxu0 %v803_v35  ;;  %v845_v34 = vpack.c.bf16 %v246_v33, %v244_v32  ;;  %v243_v35 = vld [vmem:[%s1412_s1 + $0x2e8] sm:$0xff]  ;;  %v17_v38 = vld [vmem:[%s1412_s1 + $0x10] sm:$0xff]  ;;  %v248_v43 = vld [vmem:[%s1412_s1 + $0x40] sm:$0xff] }
  0x18   :  { %806 = vmatprep.subr.bf16.mxu0 %v805_v36  ;;  %v245_v36 = vld [vmem:[%s1412_s1 + $0x300] sm:$0xff]  ;;  %v263_v39 = vld [vmem:[%s1412_s1 + $0x1a8] sm:$0xff]  ;;  %711 = vmatpush3.msra.mxu1 %v17_v38  ;;  %v265_v44 = vld [vmem:[%s1412_s1 + $0x1d8] sm:$0xff]  ;;  %v22_v20 = vsub.s32 0, %v1253_v19 }
  0x19   :  { %v847_v37 = vpack.c.bf16 %v245_v36, %v243_v35  ;;  %713 = vmatmul.mubr.msk.f32.vlgmr.msra.gmra.mrb[2].mxu1 %vm35_vm0, %v965_v3  ;;  %v266_v46 = vld [vmem:[%s1412_s1 + $0x1f0] sm:$0xff]  ;;  %v267_v50 = vld [vmem:[%s1412_s1 + $0x208] sm:$0xff]  ;;  %v268_v3 = vld [vmem:[%s1412_s1 + $0x220] sm:$0xff] }
  0x1a   :  { %v853_v49 = vpack.c.bf16 %v266_v46, %v265_v44  ;;  %v857_v52 = vpack.c.bf16 %v268_v3, %v267_v50  ;;  %v269_v55 = vld [vmem:[%s1412_s1 + $0x238] sm:$0xff]  ;;  %v270_v56 = vld [vmem:[%s1412_s1 + $0x250] sm:$0xff]  ;;  %v271_v61 = vld [vmem:[%s1412_s1 + $0x268] sm:$0xff] }
  0x1b   :  { %808 = vmatpush1.bf16.msra.mxu0 %v807_v41  ;;  %v849_v41 = vpack.c.bf16 %v264_v40, %v263_v39  ;;  %v861_v58 = vpack.c.bf16 %v270_v56, %v269_v55  ;;  %v272_v62 = vld [vmem:[%s1412_s1 + $0x280] sm:$0xff]  ;;  %v273_v5 = vld [vmem:[%s1412_s1 + $0x298] sm:$0xff]  ;;  %v274_v6 = vld [vmem:[%s1412_s1 + $0x2b0] sm:$0xff] }
  0x1c   :  { %810 = vmatprep.subr.bf16.mxu0 %v809_v42  ;;  %v247_v42 = vld [vmem:[%s1412_s1 + $0x28] sm:$0xff]  ;;  %v865_v0 = vpack.c.bf16 %v272_v62, %v271_v61  ;;  %v869_v8 = vpack.c.bf16 %v274_v6, %v273_v5  ;;  %v276_v12 = vld [vmem:[%s1412_s1 + $0x2e0] sm:$0xff]  ;;  %v278_v32 = vld [vmem:[%s1412_s1 + $0x310] sm:$0xff] }
  0x1d   :  { %v851_v45 = vpack.c.bf16 %v248_v43, %v247_v42  ;;  %850 = vmatprep.subr.bf16.mxu1 %v849_v41  ;;  %v275_v11 = vld [vmem:[%s1412_s1 + $0x2c8] sm:$0xff]  ;;  %v262_v35 = vld [vmem:[%s1412_s1 + $0x190] sm:$0xff]  ;;  %v279_v40 = vld [vmem:[%s1414_s2 + $0x3] sm:$0x3] }
  0x1e   :  { %v873_v14 = vpack.c.bf16 %v276_v12, %v275_v11  ;;  %v285_v41 = vrot.slane %v279_v40, %v22_v20  ;;  %v441_v46 = vld [vmem:[%s1412_s1 + $0x318] sm:$0xff]  ;;  %v446_v55 = vld [vmem:[%s1412_s1 + $0x390] sm:$0xff]  ;;  %v451_v62 = vld [vmem:[%s1412_s1 + $0x408] sm:$0xff] }
  0x1f   :  { %812 = vmatpush1.bf16.msra.mxu0 %v811_v47  ;;  %v249_v47 = vld [vmem:[%s1412_s1 + $0x58] sm:$0xff]  ;;  %852 = vmatpush3.bf16.msra.mxu1 %v851_v45  ;;  %v454_v5 = vld [vmem:[%s1412_s1 + $0x450] sm:$0xff] }
  0x20   :  { %814 = vmatprep.subr.bf16.mxu0 %v813_v48  ;;  %v250_v48 = vld [vmem:[%s1412_s1 + $0x70] sm:$0xff]  ;;  %854 = vmatprep.subr.bf16.mxu1 %v853_v49 }
  0x21   :  { %v855_v51 = vpack.c.bf16 %v250_v48, %v249_v47  ;;  %v442_v47 = vld [vmem:[%s1412_s1 + $0x330] sm:$0xff] }
  0x22   :  { %v882_v50 = vpack.c.bf16 %v442_v47, %v441_v46  ;;  %v638_v47 = vld [vmem:[%s1414_s2 + $0x7] ss:$0 sm:$0xff] }
  0x23   :  { %816 = vmatpush1.bf16.msra.mxu0 %v815_v53  ;;  %v251_v53 = vld [vmem:[%s1412_s1 + $0x88] sm:$0xff]  ;;  %856 = vmatpush3.bf16.msra.mxu1 %v855_v51 }
  0x24   :  { %818 = vmatprep.subr.bf16.mxu0 %v817_v54  ;;  %v252_v54 = vld [vmem:[%s1412_s1 + $0xa0] sm:$0xff]  ;;  %858 = vmatprep.subr.bf16.mxu1 %v857_v52  ;;  %v443_v51 = vld [vmem:[%s1412_s1 + $0x348] sm:$0xff] }
  0x25   :  { %v859_v57 = vpack.c.bf16 %v252_v54, %v251_v53  ;;  %v444_v52 = vld [vmem:[%s1412_s1 + $0x360] sm:$0xff]  ;;  %v445_v54 = vld [vmem:[%s1412_s1 + $0x378] sm:$0xff] }
  0x26   :  { %v885_v53 = vpack.c.bf16 %v444_v52, %v443_v51  ;;  %v888_v56 = vpack.c.bf16 %v446_v55, %v445_v54 }
  0x27   :  { %820 = vmatpush1.bf16.msra.mxu0 %v819_v59  ;;  %v253_v59 = vld [vmem:[%s1412_s1 + $0xb8] sm:$0xff]  ;;  %860 = vmatpush3.bf16.msra.mxu1 %v859_v57  ;;  %v447_v57 = vld [vmem:[%s1412_s1 + $0x3a8] sm:$0xff] }
  0x28   :  { %822 = vmatprep.subr.bf16.mxu0 %v821_v60  ;;  %v254_v60 = vld [vmem:[%s1412_s1 + $0xd0] sm:$0xff]  ;;  %862 = vmatprep.subr.bf16.mxu1 %v861_v58 }
  0x29   :  { %v863_v63 = vpack.c.bf16 %v254_v60, %v253_v59  ;;  %v449_v59 = vld [vmem:[%s1412_s1 + $0x3d8] sm:$0xff]  ;;  %v450_v60 = vld [vmem:[%s1412_s1 + $0x3f0] sm:$0xff] }
  0x2a   :  { %v894_v61 = vpack.c.bf16 %v450_v60, %v449_v59 }
  0x2b   :  { %824 = vmatpush1.bf16.msra.mxu0 %v823_v1  ;;  %v255_v1 = vld [vmem:[%s1412_s1 + $0xe8] sm:$0xff]  ;;  %864 = vmatpush3.bf16.msra.mxu1 %v863_v63  ;;  %v452_v63 = vld [vmem:[%s1412_s1 + $0x420] sm:$0xff] }
  0x2c   :  { %826 = vmatprep.subr.bf16.mxu0 %v825_v4  ;;  %v256_v4 = vld [vmem:[%s1412_s1 + $0x100] sm:$0xff]  ;;  %866 = vmatprep.subr.bf16.mxu1 %v865_v0  ;;  %v30_v0 = vsub.s32 2, %v1253_v19 }
  0x2d   :  { %v867_v7 = vpack.c.bf16 %v256_v4, %v255_v1  ;;  %v897_v1 = vpack.c.bf16 %v452_v63, %v451_v62  ;;  %v453_v4 = vld [vmem:[%s1412_s1 + $0x438] sm:$0xff] }
  0x2f   :  { %828 = vmatpush1.bf16.msra.mxu0 %v827_v9  ;;  %v257_v9 = vld [vmem:[%s1412_s1 + $0x118] sm:$0xff]  ;;  %868 = vmatpush3.bf16.msra.mxu1 %v867_v7  ;;  %v900_v7 = vpack.c.bf16 %v454_v5, %v453_v4 }
  0x30   :  { %830 = vmatprep.subr.bf16.mxu0 %v829_v10  ;;  %v258_v10 = vld [vmem:[%s1412_s1 + $0x130] sm:$0xff]  ;;  %870 = vmatprep.subr.bf16.mxu1 %v869_v8  ;;  %v455_v8 = vld [vmem:[%s1412_s1 + $0x468] sm:$0xff] }
  0x31   :  { %v871_v13 = vpack.c.bf16 %v258_v10, %v257_v9  ;;  %v456_v9 = vld [vmem:[%s1412_s1 + $0x480] sm:$0xff] }
  0x32   :  { %v903_v11 = vpack.c.bf16 %v456_v9, %v455_v8 }
  0x33   :  { %832 = vmatpush1.bf16.msra.mxu0 %v831_v15  ;;  %v259_v15 = vld [vmem:[%s1412_s1 + $0x148] sm:$0xff]  ;;  %872 = vmatpush3.bf16.msra.mxu1 %v871_v13  ;;  %v457_v13 = vld [vmem:[%s1412_s1 + $0x320] sm:$0xff] }
  0x34   :  { %834 = vmatprep.subr.bf16.mxu0 %v833_v16  ;;  %v260_v16 = vld [vmem:[%s1412_s1 + $0x160] sm:$0xff]  ;;  %874 = vmatprep.subr.bf16.mxu1 %v873_v14  ;;  %v458_v14 = vld [vmem:[%s1412_s1 + $0x338] sm:$0xff] }
  0x35   :  { %v875_v17 = vpack.c.bf16 %v260_v16, %v259_v15  ;;  %v906_v15 = vpack.c.bf16 %v458_v14, %v457_v13  ;;  %v459_v16 = vld [vmem:[%s1412_s1 + $0x350] sm:$0xff] }
  0x37   :  { %836 = vmatpush1.bf16.msra.mxu0 %v835_v21  ;;  %876 = vmatpush3.bf16.msra.mxu1 %v875_v17  ;;  %v1259_v21 = vld [vmem:[%s1414_s2] sm:$0x7]  ;;  %v460_v17 = vld [vmem:[%s1412_s1 + $0x368] sm:$0xff] }
  0x38   :  { %838 = vmatprep.subr.bf16.mxu0 %v837_v22  ;;  %v26_v22 = vsub.s32 1, %v1253_v19  ;;  %v23_v23 = vrot.slane %v1259_v21, %v22_v20  ;;  %v31_v6 = vrot.slane %v1259_v21, %v30_v0  ;;  %v909_v18 = vpack.c.bf16 %v460_v17, %v459_v16  ;;  %v461_v19 = vld [vmem:[%s1412_s1 + $0x380] sm:$0xff]  ;;  %v462_v20 = vld [vmem:[%s1412_s1 + $0x398] sm:$0xff] }
  0x3a   :  { %v27_v24 = vrot.slane %v1259_v21, %v26_v22  ;;  %v289_v42 = vrot.slane %v279_v40, %v26_v22  ;;  %v912_v21 = vpack.c.bf16 %v462_v20, %v461_v19  ;;  %v463_v22 = vld [vmem:[%s1412_s1 + $0x3b0] sm:$0xff] }
  0x3b   :  { %840 = vmatpush1.bf16.msra.mxu0 %v839_v27 }
  0x3c   :  { %842 = vmatprep.subr.bf16.mxu0 %v841_v28 }
  0x3f   :  { %844 = vmatpush1.bf16.msra.mxu0 %v843_v31  ;;  %v277_v31 = vld [vmem:[%s1412_s1 + $0x2f8] sm:$0xff] }
  0x40   :  { %846 = vmatprep.subr.bf16.mxu0 %v845_v34  ;;  %v877_v33 = vpack.c.bf16 %v278_v32, %v277_v31  ;;  %v261_v34 = vld [vmem:[%s1412_s1 + $0x178] sm:$0xff]  ;;  %v469_v31 = vld [vmem:[%s1412_s1 + $0x440] sm:$0xff] }
  0x41   :  { %v879_v36 = vpack.c.bf16 %v262_v35, %v261_v34  ;;  %v470_v32 = vld [vmem:[%s1412_s1 + $0x458] sm:$0xff]  ;;  %v471_v34 = vld [vmem:[%s1412_s1 + $0x470] sm:$0xff]  ;;  %v472_v35 = vld [vmem:[%s1412_s1 + $0x488] sm:$0xff] }
  0x42   :  { %878 = vmatprep.subr.bf16.mxu1 %v877_v33  ;;  %v924_v33 = vpack.c.bf16 %v470_v32, %v469_v31 }
  0x43   :  { %848 = vmatpush1.bf16.msra.mxu0 %v847_v37  ;;  %880 = vmatpush3.bf16.msra.mxu1 %v879_v36  ;;  %v934_v37 = vmov 0.0|0.0   ;;  %v927_v36 = vpack.c.bf16 %v472_v35, %v471_v34 }
  0x44   :  { %881 = vmatprep.subr.bf16.mxu1 %v934_v37  ;;  %905 = vmatprep.subr.bf16.mxu0 %v934_v37 }
  0xd7   :  { %v105_v25 = vpop.f32.mrb[0].mxu1 }
  0xd8   :  { %v106_v26 = vadd.f32 %v105_v25, %v23_v23  ;;  %v107_v27 = vpop.f32.mrb[1].mxu1  ;;  %v464_v23 = vld [vmem:[%s1412_s1 + $0x3c8] sm:$0xff]  ;;  %v465_v25 = vld [vmem:[%s1412_s1 + $0x3e0] sm:$0xff] }
  0xd9   :  { %v108_v28 = vadd.f32 %v107_v27, %v27_v24  ;;  %v915_v24 = vpack.c.bf16 %v464_v23, %v463_v22 }
  0xda   :  { %v180_v30 = vmax.f32 %v106_v26, 0.0  ;;  %v466_v26 = vld [vmem:[%s1412_s1 + $0x3f8] sm:$0xff] }
  0xdb   :  { %v181_v29 = vmax.f32 %v108_v28, 0.0  ;;  %v918_v27 = vpack.c.bf16 %v466_v26, %v465_v25  ;;  %v467_v28 = vld [vmem:[%s1412_s1 + $0x410] sm:$0xff] }
  0xdd   :  { %356 = vmatprep.mubr.f32.mxu0 %v181_v29  ;;  %v468_v29 = vld [vmem:[%s1412_s1 + $0x428] sm:$0xff] }
  0xde   :  { %357 = vmatmul.mubr.f32.vlgmr.msra.gmra.mrb[0].mxu0 %v180_v30  ;;  %v921_v30 = vpack.c.bf16 %v468_v29, %v467_v28 }
  0xdf   :  { %782 = vmatprep.mubr.msk.f32.mxu0 %vm933_vm1, %v932_v2  ;;  %907 = vmatpush3.bf16.msra.mxu0 %v906_v15 }
  0xe0   :  { %908 = vmatprep.subr.bf16.mxu0 %v934_v37 }
  0xe3   :  { %910 = vmatpush3.bf16.msra.mxu0 %v909_v18 }
  0xe4   :  { %911 = vmatprep.subr.bf16.mxu0 %v934_v37 }
  0xe7   :  { %913 = vmatpush3.bf16.msra.mxu0 %v912_v21 }
  0xe8   :  { %914 = vmatprep.subr.bf16.mxu0 %v934_v37 }
  0xeb   :  { %916 = vmatpush3.bf16.msra.mxu0 %v915_v24 }
  0xec   :  { %v176_v38 = vpop.f32.mrb[2].mxu1  ;;  %917 = vmatprep.subr.bf16.mxu0 %v934_v37 }
  0xed   :  { %v714_v39 = vpop.f32.mrb[3].mxu1  ;;  %v177_v10 = vadd.f32 %v176_v38, %v31_v6 }
  0xee   :  { %v636_v39 = vld [vmem:[%s1414_s2 + $0x5] ss:$0 sm:$0xff] }
  0xef   :  { %v182_v12 = vmax.f32 %v177_v10, 0.0  ;;  %919 = vmatpush3.bf16.msra.mxu0 %v918_v27 }
  0xf0   :  { %920 = vmatprep.subr.bf16.mxu0 %v934_v37 }
  0xf3   :  { %922 = vmatpush3.bf16.msra.mxu0 %v921_v30 }
  0xf4   :  { %923 = vmatprep.subr.bf16.mxu0 %v934_v37 }
  0xf7   :  { %925 = vmatpush3.bf16.msra.mxu0 %v924_v33 }
  0xf8   :  { %926 = vmatprep.subr.bf16.mxu0 %v934_v37 }
  0xfb   :  { %928 = vmatpush3.bf16.msra.mxu0 %v927_v36 }
 0x1b1   :  { %v358_v43 = vpop.f32.mrb[0].mxu0 }
 0x1b2   :  { %v359_v44 = vadd.f32 %v358_v43, %v285_v41  ;;  %v360_v45 = vpop.f32.mrb[1].mxu0 }
 0x1b3   :  { %v361_v48 = vadd.f32 %v360_v45, %v289_v42 }
 0x1b4   :  { %v363_v3 = vmax.f32 %v359_v44, 0.0 }
 0x1b5   :  { %v364_v49 = vmax.f32 %v361_v48, 0.0 }
 0x1b7   :  { %435 = vmatprep.mubr.f32.mxu1 %v364_v49 }
 0x1b8   :  { %436 = vmatmul.mubr.f32.vlgmr.msra.gmra.mrb[4].mxu1 %v363_v3 }
 0x1b9   :  { %883 = vmatpush3.bf16.msra.mxu1 %v882_v50  ;;  %747 = vmatprep.mubr.msk.f32.mxu1 %vm933_vm1, %v932_v2  ;;  %v448_v2 = vld [vmem:[%s1412_s1 + $0x3c0] sm:$0xff] }
 0x1ba   :  { %884 = vmatprep.subr.bf16.mxu1 %v934_v37  ;;  %v891_v58 = vpack.c.bf16 %v448_v2, %v447_v57 }
 0x1bd   :  { %886 = vmatpush3.bf16.msra.mxu1 %v885_v53 }
 0x1be   :  { %887 = vmatprep.subr.bf16.mxu1 %v934_v37 }
 0x1c1   :  { %889 = vmatpush3.bf16.msra.mxu1 %v888_v56 }
 0x1c2   :  { %890 = vmatprep.subr.bf16.mxu1 %v934_v37 }
 0x1c5   :  { %892 = vmatpush3.bf16.msra.mxu1 %v891_v58 }
 0x1c6   :  { %893 = vmatprep.subr.bf16.mxu1 %v934_v37 }
 0x1c9   :  { %895 = vmatpush3.bf16.msra.mxu1 %v894_v61 }
 0x1ca   :  { %896 = vmatprep.subr.bf16.mxu1 %v934_v37 }
 0x1cd   :  { %898 = vmatpush3.bf16.msra.mxu1 %v897_v1 }
 0x1ce   :  { %899 = vmatprep.subr.bf16.mxu1 %v934_v37 }
 0x1d1   :  { %901 = vmatpush3.bf16.msra.mxu1 %v900_v7 }
 0x1d2   :  { %902 = vmatprep.subr.bf16.mxu1 %v934_v37  ;;  %v637_v37 = vld [vmem:[%s1414_s2 + $0x6] ss:$0 sm:$0xff] }
 0x1d5   :  { %904 = vmatpush3.bf16.msra.mxu1 %v903_v11 }
 0x1d8   :  { %748 = vmatmul.mubr.f32.vlgmr.msra.gmra.mrb[6].mxu1 %v182_v12 }
 0x28b   :  { %v673_v38 = vpop.f32.mrb[4].mxu1 }
 0x28c   :  { %v674_v40 = vpop.f32.mrb[5].mxu1 }
 0x28d   :  { %v675_v41 = vadd.f32 %v674_v40, %v673_v38 }
 0x28f   :  { %v438_v42 = vadd.f32 %v675_v41, %v636_v39 }
 0x291   :  { %628 = vst [vmem:[%s1415_s3] sm:$0xff] %v438_v42 }
 0x2ab   :  { %v547_v43 = vpop.f32.mrb[6].mxu1 }
 0x2ac   :  { %v548_v44 = vadd.f32 %v637_v37, %v547_v43  ;;  %v749_v45 = vpop.f32.mrb[7].mxu1 }
 0x2ae   :  { %v551_v46 = vmax.f32 %v548_v44, 0.0 }
 0x2b0   :  { %783 = vmatmul.mubr.f32.vlgmr.msra.gmra.mrb[2].mxu0 %v551_v46 }
 0x383   :  { %v624_v48 = vpop.f32.mrb[2].mxu0 }
 0x384   :  { %v625_v49 = vadd.f32 %v638_v47, %v624_v48  ;;  %v784_v50 = vpop.f32.mrb[3].mxu0 }
 0x386   :  { %629 = vst [vmem:[%s1415_s3 + $0x8] sm:$0xff] %v625_v49 }

</bundles_post_ra>
